<compile_context>
chip_gen: v6e
topology: v6e:2x2x1
jax: 0.10.0
libtpu: 0.0.40
codegen_flags: <defaults>
</compile_context>

<pallas_src>
import jax
import jax.numpy as jnp
from jax.experimental import pallas as pl
from jax.experimental.pallas import tpu as pltpu


IN_DIM = 2
HIDDEN = 32
OUT_DIM = 1

TILE_M_MAX = 4096   # rows per grid step (sweep 2048-8192; VMEM stays tiny)
CHUNK_M = 512       # lanes per register-friendly inner sub-chunk


def _round_up(a, b):
    return ((a + b - 1) // b) * b


def _mlp_kernel(x_ref, w1t_ref, b1_ref, w2t_ref, b2_ref, w3_ref, b3_ref, o_ref):
    """One tile of rows through the 3-layer tanh MLP (lane-dense transposed layout).

    x_ref  : (TILE_M, IN_DIM)   w1t_ref: (HIDDEN, IN_DIM)   b1_ref: (HIDDEN, 1)
    w2t_ref: (HIDDEN, HIDDEN)   b2_ref : (HIDDEN, 1)
    w3_ref : (HIDDEN, OUT_DIM)  b3_ref : (1, 1)
    o_ref  : (OUT_DIM, TILE_M)
    """
    w1t = w1t_ref[...]                     # (HIDDEN, IN_DIM)
    b1 = b1_ref[...]                       # (HIDDEN, 1)
    w2t = w2t_ref[...]                     # (HIDDEN, HIDDEN)
    b2 = b2_ref[...]                       # (HIDDEN, 1)
    w3 = w3_ref[...]                       # (HIDDEN, OUT_DIM)
    b3 = b3_ref[...]                       # (1, 1)

    tile_m = x_ref.shape[0]

    # Static (trace-time) loop over lane sub-chunks: keeps per-chunk live
    # ranges small while the outer BlockSpec tile amortizes per-step overhead.
    for start in range(0, tile_m, CHUNK_M):
        size = min(CHUNK_M, tile_m - start)

        # Per-chunk load + thin transpose (size, IN_DIM) -> (IN_DIM, size).
        # Puts the row dimension on the 128-lane axis; XLU slot is idle here.
        xT = x_ref[start:start + size, :].T

        # Layer 1: K=2 contraction as VPU broadcast-FMAs (no MXU round trip).
        acc = w1t[:, 0:1] * xT[0:1, :]
        for k in range(1, IN_DIM):         # unrolled at trace time (IN_DIM=2)
            acc = acc + w1t[:, k:k + 1] * xT[k:k + 1, :]
        # jnp.tanh lowers to the EUP; keep f32 (feeds PDE autograd downstream).
        h1 = jnp.tanh(acc + b1)            # (HIDDEN, size)

        # Layer 2: 32x32 contraction on the MXU, f32 accumulation.
        h2 = jnp.tanh(
            jnp.dot(w2t, h1, preferred_element_type=jnp.float32) + b2
        )                                  # (HIDDEN, size)

        # Layer 3: OUT_DIM=1 -> elementwise multiply + sublane reduce (XLU).
        u = jnp.sum(w3 * h2, axis=0, keepdims=True) + b3   # (1, size)

        # Lane-dense store into the (1, TILE_M) output block.
        o_ref[:, start:start + size] = u.astype(o_ref.dtype)


def pinn_forward(xt, params):
    """PINN_Basic.forward: u_xt = nn_model(xt).

    xt: [B, N, IN_DIM] float32  ->  returns [B, N, OUT_DIM] float32
    """
    w1, b1, w2, b2, w3, b3 = params
    B, N, _ = xt.shape
    M = B * N

    # Flatten rows only (free reshape).  No pad / no transpose in the wrapper:
    # those are full extra HBM passes.  Non-divisible grids are handled by
    # Pallas boundary blocks; their unspecified tail rows never feed a
    # cross-row reduction and their outputs are masked on write-back.
    x2d = xt.reshape(M, IN_DIM).astype(jnp.float32)

    # Adaptive tile size: big tiles amortize the ~600-cycle per-step overhead,
    # small problems don't compute wasted rows, and (when possible) we keep
    # >= 2 grid steps so v7x's two TensorCores can split the "parallel" grid.
    m_aligned = _round_up(M, 128)
    if m_aligned <= 256:
        tile_m = m_aligned
    else:
        tile_m = min(TILE_M_MAX, _round_up(pl.cdiv(m_aligned, 2), 128))
    grid_m = pl.cdiv(M, tile_m)

    # Transposed / column-shaped parameters (tiny, ~5 KiB total).
    w1t = w1.T                              # (HIDDEN, IN_DIM)
    b1c = b1.reshape(HIDDEN, 1)
    w2t = w2.T                              # (HIDDEN, HIDDEN), [out, in]
    b2c = b2.reshape(HIDDEN, 1)
    w3c = w3.reshape(HIDDEN, OUT_DIM)
    b3c = b3.reshape(1, 1)

    cost = pl.CostEstimate(
        flops=2 * M * (IN_DIM * HIDDEN + HIDDEN * HIDDEN + HIDDEN * OUT_DIM),
        transcendentals=2 * M * HIDDEN,
        bytes_accessed=4
        * (
            M * (IN_DIM + OUT_DIM)
            + IN_DIM * HIDDEN + HIDDEN
            + HIDDEN * HIDDEN + HIDDEN
            + HIDDEN * OUT_DIM + OUT_DIM
        ),
    )

    outT = pl.pallas_call(
        _mlp_kernel,
        out_shape=jax.ShapeDtypeStruct((OUT_DIM, M), jnp.float32),
        grid_spec=pltpu.PrefetchScalarGridSpec(
            num_scalar_prefetch=0,
            grid=(grid_m,),
            in_specs=[
                pl.BlockSpec((tile_m, IN_DIM), lambda i: (i, 0)),   # x tile
                pl.BlockSpec((HIDDEN, IN_DIM), lambda i: (0, 0)),   # w1^T
                pl.BlockSpec((HIDDEN, 1), lambda i: (0, 0)),        # b1
                pl.BlockSpec((HIDDEN, HIDDEN), lambda i: (0, 0)),   # w2^T
                pl.BlockSpec((HIDDEN, 1), lambda i: (0, 0)),        # b2
                pl.BlockSpec((HIDDEN, OUT_DIM), lambda i: (0, 0)),  # w3 column
                pl.BlockSpec((1, OUT_DIM), lambda i: (0, 0)),       # b3
            ],
            out_specs=pl.BlockSpec((OUT_DIM, tile_m), lambda i: (0, i)),
        ),
        compiler_params=pltpu.CompilerParams(
            dimension_semantics=("parallel",)  # lets v7x split grid steps across TCs
        ),
        cost_estimate=cost,
    )(x2d, w1t, b1c, w2t, b2c, w3c, b3c)

    # (1, M) row-major is the same contiguous data as (B, N, 1): free reshape.
    return outT.reshape(B, N, OUT_DIM)


def init_params(key):
    """Deterministic Xavier-uniform-like init (PyTorch-style [in, out] weights)."""
    k1, k2, k3 = jax.random.split(key, 3)

    def xavier(k, fan_in, fan_out):
        bound = jnp.sqrt(6.0 / (fan_in + fan_out))
        return jax.random.uniform(
            k, (fan_in, fan_out), dtype=jnp.float32, minval=-bound, maxval=bound
        )

    w1 = xavier(k1, IN_DIM, HIDDEN)
    b1 = jnp.zeros((HIDDEN,), jnp.float32)
    w2 = xavier(k2, HIDDEN, HIDDEN)
    b2 = jnp.zeros((HIDDEN,), jnp.float32)
    w3 = xavier(k3, HIDDEN, OUT_DIM)
    b3 = jnp.zeros((OUT_DIM,), jnp.float32)
    return (w1, b1, w2, b2, w3, b3)


def _reference_forward(xt, params):
    """Plain-JAX reference of nn_model(xt) for correctness checks."""
    w1, b1, w2, b2, w3, b3 = params
    h = jnp.tanh(xt @ w1 + b1)
    h = jnp.tanh(h @ w2 + b2)
    return h @ w3 + b3


# TODO(synk): compute_pdeloss_rd / compute_loss need autograd.grad (du/dx, d2u/dx2)
# — differentiation transforms (jax.grad/jvp) wrapped around this forward, not
# forward ops, so they stay outside the kernel.

if __name__ == "__main__":
    key = jax.random.PRNGKey(0)
    pkey, xkey, xkey2 = jax.random.split(key, 3)

    params = init_params(pkey)

    # Small demo: 2 batches of 8 (x, t) collocation points.
    B, N = 2, 8
    xt = jax.random.uniform(xkey, (B, N, IN_DIM), dtype=jnp.float32)
    u = jax.block_until_ready(pinn_forward(xt, params))
    u_ref = _reference_forward(xt, params)
    assert u.shape == (B, N, OUT_DIM)
    assert jnp.allclose(u, u_ref, atol=1e-5, rtol=1e-5)

    # Also exercise the multi-step grid + non-128-aligned boundary-block path.
    B2, N2 = 2, 300
    xt2 = jax.random.uniform(xkey2, (B2, N2, IN_DIM), dtype=jnp.float32)
    u2 = jax.block_until_ready(pinn_forward(xt2, params))
    assert jnp.allclose(u2, _reference_forward(xt2, params), atol=1e-5, rtol=1e-5)

    print("KERNEL_OK")
</pallas_src>

<mosaic_0001>
module attributes {stable_mosaic.version = 11 : i64} {
  func.func @_mlp_kernel(%arg0: i32, %arg1: memref<128x2xf32, #tpu.memory_space<vmem>>, %arg2: memref<32x2xf32, #tpu.memory_space<vmem>>, %arg3: memref<32x1xf32, #tpu.memory_space<vmem>>, %arg4: memref<32x32xf32, #tpu.memory_space<vmem>>, %arg5: memref<32x1xf32, #tpu.memory_space<vmem>>, %arg6: memref<32x1xf32, #tpu.memory_space<vmem>>, %arg7: memref<1x1xf32, #tpu.memory_space<vmem>>, %arg8: memref<1x128xf32, #tpu.memory_space<vmem>>) attributes {dimension_semantics = [#tpu.dimension_semantics<parallel>], iteration_bounds = array<i64: 1>, scalar_prefetch = 0 : i64, scratch_operands = 0 : i64, tpu.core_type = #tpu.core_type<tc>, window_params = [{transform_indices = @transform_0, window_bounds = array<i64: 128, 2>}, {pipeline_mode = #tpu.pipeline_mode<synchronous>, transform_indices = @transform_1, window_bounds = array<i64: 32, 2>}, {pipeline_mode = #tpu.pipeline_mode<synchronous>, transform_indices = @transform_2, window_bounds = array<i64: 32, 1>}, {pipeline_mode = #tpu.pipeline_mode<synchronous>, transform_indices = @transform_3, window_bounds = array<i64: 32, 32>}, {pipeline_mode = #tpu.pipeline_mode<synchronous>, transform_indices = @transform_4, window_bounds = array<i64: 32, 1>}, {pipeline_mode = #tpu.pipeline_mode<synchronous>, transform_indices = @transform_5, window_bounds = array<i64: 32, 1>}, {pipeline_mode = #tpu.pipeline_mode<synchronous>, transform_indices = @transform_6, window_bounds = array<i64: 1, 1>}, {transform_indices = @transform_7, window_bounds = array<i64: 1, 128>}]} {
    %c0 = arith.constant 0 : index
    %c0_0 = arith.constant 0 : index
    %0 = vector.load %arg2[%c0, %c0_0] : memref<32x2xf32, #tpu.memory_space<vmem>>, vector<32x2xf32>
    %c0_1 = arith.constant 0 : index
    %c0_2 = arith.constant 0 : index
    %1 = vector.load %arg3[%c0_1, %c0_2] : memref<32x1xf32, #tpu.memory_space<vmem>>, vector<32x1xf32>
    %c0_3 = arith.constant 0 : index
    %c0_4 = arith.constant 0 : index
    %2 = vector.load %arg4[%c0_3, %c0_4] : memref<32x32xf32, #tpu.memory_space<vmem>>, vector<32x32xf32>
    %c0_5 = arith.constant 0 : index
    %c0_6 = arith.constant 0 : index
    %3 = vector.load %arg5[%c0_5, %c0_6] : memref<32x1xf32, #tpu.memory_space<vmem>>, vector<32x1xf32>
    %c0_7 = arith.constant 0 : index
    %c0_8 = arith.constant 0 : index
    %4 = vector.load %arg6[%c0_7, %c0_8] : memref<32x1xf32, #tpu.memory_space<vmem>>, vector<32x1xf32>
    %c0_9 = arith.constant 0 : index
    %c0_10 = arith.constant 0 : index
    %5 = vector.load %arg7[%c0_9, %c0_10] : memref<1x1xf32, #tpu.memory_space<vmem>>, vector<1x1xf32>
    %c0_11 = arith.constant 0 : index
    %c0_12 = arith.constant 0 : index
    %6 = vector.load %arg1[%c0_11, %c0_12] : memref<128x2xf32, #tpu.memory_space<vmem>>, vector<128x2xf32>
    %7 = tpu.transpose %6, [1, 0] : vector<128x2xf32> -> vector<2x128xf32>
    %8 = vector.extract_strided_slice %0 {offsets = [0, 0], sizes = [32, 1], strides = [1, 1]} : vector<32x2xf32> to vector<32x1xf32>
    %9 = vector.extract_strided_slice %7 {offsets = [0, 0], sizes = [1, 128], strides = [1, 1]} : vector<2x128xf32> to vector<1x128xf32>
    %10 = vector.broadcast %8 : vector<32x1xf32> to vector<32x128xf32>
    %11 = vector.broadcast %9 : vector<1x128xf32> to vector<32x128xf32>
    %12 = arith.mulf %10, %11 : vector<32x128xf32>
    %13 = vector.extract_strided_slice %0 {offsets = [0, 1], sizes = [32, 1], strides = [1, 1]} : vector<32x2xf32> to vector<32x1xf32>
    %14 = vector.extract_strided_slice %7 {offsets = [1, 0], sizes = [1, 128], strides = [1, 1]} : vector<2x128xf32> to vector<1x128xf32>
    %15 = vector.broadcast %13 : vector<32x1xf32> to vector<32x128xf32>
    %16 = vector.broadcast %14 : vector<1x128xf32> to vector<32x128xf32>
    %17 = arith.mulf %15, %16 : vector<32x128xf32>
    %18 = arith.addf %12, %17 : vector<32x128xf32>
    %19 = vector.broadcast %1 : vector<32x1xf32> to vector<32x128xf32>
    %20 = arith.addf %18, %19 : vector<32x128xf32>
    %21 = math.tanh %20 : vector<32x128xf32>
    %cst = arith.constant dense<0.000000e+00> : vector<32x128xf32>
    %22 = tpu.matmul %2, %21, %cst {dimension_numbers = #tpu.dot_dimension_numbers<[1], [0], [0], [1], [0, 0, 1, 1], [], []>} : vector<32x32xf32>, vector<32x128xf32>, vector<32x128xf32> -> vector<32x128xf32>
    %23 = vector.broadcast %3 : vector<32x1xf32> to vector<32x128xf32>
    %24 = arith.addf %22, %23 : vector<32x128xf32>
    %25 = math.tanh %24 : vector<32x128xf32>
    %26 = vector.broadcast %4 : vector<32x1xf32> to vector<32x128xf32>
    %27 = arith.mulf %26, %25 : vector<32x128xf32>
    %cst_13 = arith.constant dense<0.000000e+00> : vector<128xf32>
    %28 = vector.multi_reduction <add>, %27, %cst_13 [0] : vector<32x128xf32> to vector<128xf32>
    %29 = vector.shape_cast %28 : vector<128xf32> to vector<1x128xf32>
    %30 = vector.broadcast %5 : vector<1x1xf32> to vector<1x128xf32>
    %31 = arith.addf %29, %30 : vector<1x128xf32>
    %c0_14 = arith.constant 0 : index
    %c0_15 = arith.constant 0 : index
    %32 = vector.load %arg8[%c0_14, %c0_15] : memref<1x128xf32, #tpu.memory_space<vmem>>, vector<1x128xf32>
    tpu.vector_store %arg8[%c0_14, %c0_15], %31 {strides = array<i32>} : memref<1x128xf32, #tpu.memory_space<vmem>>, vector<1x128xf32>,
    return
  }
  func.func @transform_0(%arg0: i32) -> (i32, i32) {
    %c0_i32 = arith.constant 0 : i32
    %c0_i32_0 = arith.constant 0 : i32
    return %arg0, %c0_i32 : i32, i32
  }
  func.func @transform_1(%arg0: i32) -> (i32, i32) {
    %c0_i32 = arith.constant 0 : i32
    %c0_i32_0 = arith.constant 0 : i32
    %c0_i32_1 = arith.constant 0 : i32
    return %c0_i32, %c0_i32_0 : i32, i32
  }
  func.func @transform_2(%arg0: i32) -> (i32, i32) {
    %c0_i32 = arith.constant 0 : i32
    %c0_i32_0 = arith.constant 0 : i32
    %c0_i32_1 = arith.constant 0 : i32
    return %c0_i32, %c0_i32_0 : i32, i32
  }
  func.func @transform_3(%arg0: i32) -> (i32, i32) {
    %c0_i32 = arith.constant 0 : i32
    %c0_i32_0 = arith.constant 0 : i32
    %c0_i32_1 = arith.constant 0 : i32
    return %c0_i32, %c0_i32_0 : i32, i32
  }
  func.func @transform_4(%arg0: i32) -> (i32, i32) {
    %c0_i32 = arith.constant 0 : i32
    %c0_i32_0 = arith.constant 0 : i32
    %c0_i32_1 = arith.constant 0 : i32
    return %c0_i32, %c0_i32_0 : i32, i32
  }
  func.func @transform_5(%arg0: i32) -> (i32, i32) {
    %c0_i32 = arith.constant 0 : i32
    %c0_i32_0 = arith.constant 0 : i32
    %c0_i32_1 = arith.constant 0 : i32
    return %c0_i32, %c0_i32_0 : i32, i32
  }
  func.func @transform_6(%arg0: i32) -> (i32, i32) {
    %c0_i32 = arith.constant 0 : i32
    %c0_i32_0 = arith.constant 0 : i32
    %c0_i32_1 = arith.constant 0 : i32
    return %c0_i32, %c0_i32_0 : i32, i32
  }
  func.func @transform_7(%arg0: i32) -> (i32, i32) {
    %c0_i32 = arith.constant 0 : i32
    %c0_i32_0 = arith.constant 0 : i32
    return %c0_i32, %arg0 : i32, i32
  }
}

</mosaic_0001>

<bundles_post_ra>
// kernel: tpu_custom_call.1
= control target key start
LH: loop header
LB: loop body
LE: loop exit
PB: predicated region body
PF: predicated region fallthrough
CT: control target
= control target key end

     0   :  { %s613_s0 = inlined_call_operand.vmem [shape: f32[16,2], index: 0, kind: input, shape index: {}]   ;;  %s614_s1 = inlined_call_operand.vmem [shape: f32[32,2], index: 1, kind: input, shape index: {}]   ;;  %s615_s2 = inlined_call_operand.vmem [shape: f32[32,1], index: 2, kind: input, shape index: {}]   ;;  %s616_s3 = inlined_call_operand.vmem [shape: f32[32,32], index: 3, kind: input, shape index: {}]   ;;  %s617_s4 = inlined_call_operand.vmem [shape: f32[32,1], index: 4, kind: input, shape index: {}]   ;;  %s618_s5 = inlined_call_operand.vmem [shape: f32[32,1], index: 5, kind: input, shape index: {}]   ;;  %s619_s6 = inlined_call_operand.<no memory space> [shape: f32[1,1], index: 6, kind: input, shape index: {}]   ;;  %s620_s7 = inlined_call_operand.hbm [shape: f32[1,16], index: 7, kind: output, shape index: {}]  }
   0x1   :  { %v12_v0 = vstv %s619_s6 }
   0x2   :  { %13 = vst [vmem:[#allocation2] sm:$0x1] %v12_v0 }
   0x3   :  { %v32_v1 = vld [vmem:[%s614_s1 + $0x18] sm:$0xff]  ;;  %v31_v2 = vld [vmem:[%s614_s1 + $0x10] sm:$0xff]  ;;  %v444_v3 = vmov 1   ;;  %v445_v4 = vmov 0   ;;  %v30_v5 = vld [vmem:[%s614_s1 + $0x8] sm:$0xff] }
   0x4   :  { %399 = vset.pattern.permute.xlu0 %v444_v3  ;;  %400 = vset.pattern.permute.xlu1 %v445_v4 }
   0x5   :  { %139 = vperm.xlu0 %399, %v32_v1   ;;  %110 = vperm.xlu1 %400, %v31_v2  }
   0x9   :  { %401 = vset.pattern.permute.xlu1 %v444_v3  ;;  %131 = vperm.xlu0 %399, %v30_v5  }
   0xa   :  { %135 = vperm.xlu1 %401, %v31_v2  }
   0xd   :  { %403 = vset.pattern.permute.xlu0 %v445_v4 }
   0xe   :  { %402 = vset.pattern.permute.xlu1 %v445_v4  ;;  %115 = vperm.xlu0 %403, %v32_v1  }
   0xf   :  { %14 = vsyncpa [#allocation4], 0  ;;  %105 = vperm.xlu1 %402, %v30_v5   ;;  %v29_v6 = vld [vmem:[%s614_s1] sm:$0xff]  ;;  %v36_v7 = vld [vmem:[%s615_s2 + $0x18] sm:$0xff]  ;;  %vm202_vm0 = vcmask 261120   ;;  %v118_v43 = vlaneseq }
  0x10   :  { %v34_v8 = vld [vmem:[%s615_s2 + $0x8] sm:$0xff]  ;;  %v35_v9 = vld [vmem:[%s615_s2 + $0x10] sm:$0xff]  ;;  %v33_v10 = vld [vmem:[%s615_s2] sm:$0xff] }
  0x11   :  { %v41_v11 = vld [vmem:[%s617_s4] sm:$0xff]  ;;  %v42_v12 = vld [vmem:[%s617_s4 + $0x8] sm:$0xff]  ;;  %v43_v13 = vld [vmem:[%s617_s4 + $0x10] sm:$0xff]  ;;  %v594_v46 = vshrl.u32 %v118_v43, 7 }
  0x12   :  { %100 = vperm.xlu0 %403, %v29_v6   ;;  %v44_v14 = vld [vmem:[%s617_s4 + $0x18] sm:$0xff]  ;;  %v50_v15 = vld [vmem:[%s613_s0] sm:$0xff]  ;;  %v51_v17 = vld [vmem:[%s613_s0 + $0x8] sm:$0xff] }
  0x13   :  { %171 = vperm.xlu1 %402, %v36_v7   ;;  %v45_v16 = vld [vmem:[%s618_s5] sm:$0xff]  ;;  %v46_v18 = vld [vmem:[%s618_s5 + $0x8] sm:$0xff]  ;;  %v52_v19 = vld [vmem:[%s613_s0 + $0x10] sm:$0xff]  ;;  %v120_v49 = vsub.s32 0, %v594_v46  ;;  %v144_v50 = vsub.s32 1, %v594_v46 }
  0x14   :  { %v47_v20 = vld [vmem:[%s618_s5 + $0x10] sm:$0xff]  ;;  %v53_v21 = vld [vmem:[%s613_s0 + $0x18] sm:$0xff]  ;;  %v54_v23 = vld [vmem:[%s613_s0 + $0x20] sm:$0xff] }
  0x15   :  { %v48_v22 = vld [vmem:[%s618_s5 + $0x18] sm:$0xff]  ;;  %v49_v24 = vld [vmem:[#allocation2] sm:$0x1]  ;;  %v55_v25 = vld [vmem:[%s613_s0 + $0x28] sm:$0xff] }
  0x16   :  { %161 = vperm.xlu0 %403, %v34_v8   ;;  %v56_v26 = vld [vmem:[%s613_s0 + $0x30] sm:$0xff]  ;;  %v57_v27 = vld [vmem:[%s613_s0 + $0x38] sm:$0xff]  ;;  %v58_v28 = vld [vmem:[%s613_s0 + $0x40] sm:$0xff] }
  0x17   :  { %404 = vset.pattern.permute.xlu1 %v444_v3  ;;  %v37_v29 = vld [vmem:[%s616_s3] sm:$0xff]  ;;  %v39_v30 = vld [vmem:[%s616_s3 + $0x10] sm:$0xff]  ;;  %v59_v31 = vld [vmem:[%s613_s0 + $0x48] sm:$0xff] }
  0x18   :  { %127 = vperm.xlu1 %404, %v29_v6   ;;  %382 = vmatprep.mubr.msk.f32.mxu0 %vm202_vm0, %v37_v29  ;;  %v60_v32 = vld [vmem:[%s613_s0 + $0x50] sm:$0xff]  ;;  %v61_v33 = vld [vmem:[%s613_s0 + $0x58] sm:$0xff]  ;;  %v62_v34 = vld [vmem:[%s613_s0 + $0x60] sm:$0xff] }
  0x19   :  { %385 = vmatprep.mubr.msk.f32.mxu1 %vm202_vm0, %v39_v30  ;;  %v63_v35 = vld [vmem:[%s613_s0 + $0x68] sm:$0xff]  ;;  %v64_v36 = vld [vmem:[%s613_s0 + $0x70] sm:$0xff]  ;;  %v65_v37 = vld [vmem:[%s613_s0 + $0x78] sm:$0xff] }
  0x1c   :  { %405 = vset.pattern.permute.xlu1 %v445_v4 }
  0x1d   :  { %166 = vperm.xlu1 %405, %v35_v9  }
  0x21   :  { %156 = vperm.xlu1 %405, %v33_v10  }
  0x25   :  { %184 = vperm.xlu1 %405, %v41_v11  }
  0x29   :  { %189 = vperm.xlu1 %405, %v42_v12  }
  0x2d   :  { %194 = vperm.xlu1 %405, %v43_v13   ;;  %v38_v13 = vld [vmem:[%s616_s3 + $0x8] sm:$0xff] }
  0x31   :  { %199 = vperm.xlu1 %405, %v44_v14   ;;  %v40_v14 = vld [vmem:[%s616_s3 + $0x18] sm:$0xff]  ;;  %s446_s3 = smov [#allocation3]  }
  0x32   :  { %s354_s17 = sshll.u32 %s446_s3, 4  ;;  %s355_s17 = int_to_ptr.vmem [resolvable:$true] %s354_s17 }
  0x33   :  { %s422_s18 = scalar_lea.vmem %s355_s17, 16  ;;  %s426_s19 = scalar_lea.vmem %s355_s17, 32 }
  0x34   :  { %66 = vxpose.xlu0.b32.start [1/16] (narrow) %v50_v15, 8  ;;  %p423_p0 = scmp.ne.s32.totalorder %s355_s17, %s422_s18  ;;  %p427_p1 = scmp.lt.s32.totalorder %s355_s17, %s355_s17 }
  0x35   :  { %306 = vperm.xlu1 %405, %v45_v16   ;;  %p428_p2 = scmp.lt.s32.totalorder %s426_s19, %s422_s18 }
  0x37   :  { %p429_p3 = por %p428_p2, %p427_p1 }
  0x38   :  { %67 = vxpose.xlu0.b32.cont [2/16] (narrow) %v51_v17, 8 }
  0x39   :  { %311 = vperm.xlu1 %405, %v46_v18   ;;  %p430_p4 = pnand %p429_p3, %p423_p0 }
  0x3c   :  { %68 = vxpose.xlu0.b32.cont [3/16] (narrow) %v52_v19, 8 }
  0x3d   :  { %316 = vperm.xlu1 %405, %v47_v20  }
  0x40   :  { %69 = vxpose.xlu0.b32.cont [4/16] (narrow) %v53_v21, 8 }
  0x41   :  { %321 = vperm.xlu1 %405, %v48_v22  }
  0x44   :  { %70 = vxpose.xlu0.b32.cont [5/16] (narrow) %v54_v23, 8 }
  0x45   :  { %339 = vperm.xlu1 %405, %v49_v24  }
  0x48   :  { %71 = vxpose.xlu0.b32.cont [6/16] (narrow) %v55_v25, 8 }
  0x4c   :  { %72 = vxpose.xlu0.b32.cont [7/16] (narrow) %v56_v26, 8 }
  0x50   :  { %73 = vxpose.xlu0.b32.cont [8/16] (narrow) %v57_v27, 8 }
  0x54   :  { %74 = vxpose.xlu0.b32.cont [9/16] (narrow) %v58_v28, 8 }
  0x58   :  { %75 = vxpose.xlu0.b32.cont [10/16] (narrow) %v59_v31, 8 }
  0x5c   :  { %76 = vxpose.xlu0.b32.cont [11/16] (narrow) %v60_v32, 8 }
  0x60   :  { %77 = vxpose.xlu0.b32.cont [12/16] (narrow) %v61_v33, 8 }
  0x64   :  { %78 = vxpose.xlu0.b32.cont [13/16] (narrow) %v62_v34, 8 }
  0x68   :  { %79 = vxpose.xlu0.b32.cont [14/16] (narrow) %v63_v35, 8 }
  0x6c   :  { %80 = vxpose.xlu0.b32.cont [15/16] (narrow) %v64_v36, 8 }
  0x70   :  { %81 = vxpose.xlu0.b32.end [16/16] (narrow) %v65_v37, 8 }
  0x80   :  { %v140_v38 = vpop.permute.xlu0 %139  ;;  %v111_v39 = vpop.permute.xlu1 %110 }
  0x84   :  { %v132_v40 = vpop.permute.xlu0 %131 }
  0x85   :  { %v136_v41 = vpop.permute.xlu1 %135 }
  0x89   :  { %v116_v42 = vpop.permute.xlu0 %115 }
  0x8a   :  { %v106_v44 = vpop.permute.xlu1 %105 }
  0x8d   :  { %v101_v45 = vpop.permute.xlu0 %100 }
  0x8e   :  { %v172_v47 = vpop.permute.xlu1 %171 }
  0x91   :  { %v162_v48 = vpop.permute.xlu0 %161 }
  0x93   :  { %v128_v54 = vpop.permute.xlu1 %127 }
  0x98   :  { %v167_v1 = vpop.permute.xlu1 %166 }
  0x9c   :  { %v157_v7 = vpop.permute.xlu1 %156 }
  0xa0   :  { %v185_v15 = vpop.permute.xlu1 %184 }
  0xa4   :  { %v190_v16 = vpop.permute.xlu1 %189 }
  0xa8   :  { %v195_v17 = vpop.permute.xlu1 %194 }
  0xac   :  { %v200_v18 = vpop.permute.xlu1 %199 }
  0xb0   :  { %v82_v51 = vpop.trf.xlu0  ;;  %v307_v27 = vpop.permute.xlu1 %306 }
  0xb1   :  { %v121_v52 = vrot.slane %v82_v51, %v120_v49  ;;  %v145_v53 = vrot.slane %v82_v51, %v144_v50 }
  0xb3   :  { %v124_v55 = vmul.f32 %v121_v52, %v111_v39  ;;  %v125_v56 = vmul.f32 %v121_v52, %v116_v42  ;;  %v148_v57 = vmul.f32 %v145_v53, %v136_v41  ;;  %v149_v58 = vmul.f32 %v145_v53, %v140_v38 }
  0xb4   :  { %v123_v59 = vmul.f32 %v121_v52, %v106_v44  ;;  %v147_v60 = vmul.f32 %v145_v53, %v132_v40  ;;  %v122_v62 = vmul.f32 %v121_v52, %v101_v45  ;;  %v146_v63 = vmul.f32 %v145_v53, %v128_v54  ;;  %v312_v28 = vpop.permute.xlu1 %311 }
  0xb5   :  { %v153_v61 = vadd.f32 %v149_v58, %v125_v56  ;;  %v152_v0 = vadd.f32 %v148_v57, %v124_v55 }
  0xb6   :  { %v151_v2 = vadd.f32 %v147_v60, %v123_v59  ;;  %v150_v4 = vadd.f32 %v146_v63, %v122_v62 }
  0xb7   :  { %v177_v3 = vadd.f32 %v172_v47, %v153_v61  ;;  %v176_v5 = vadd.f32 %v167_v1, %v152_v0 }
  0xb8   :  { %v175_v6 = vadd.f32 %v162_v48, %v151_v2  ;;  %v174_v8 = vadd.f32 %v157_v7, %v150_v4  ;;  %v317_v30 = vpop.permute.xlu1 %316 }
  0xb9   :  { %406 = vtanh.f32 %v177_v3 }
  0xba   :  { %408 = vtanh.f32 %v176_v5 }
  0xbb   :  { %410 = vtanh.f32 %v175_v6 }
  0xbc   :  { %412 = vtanh.f32 %v174_v8  ;;  %v322_v38 = vpop.permute.xlu1 %321 }
  0xc0   :  { %v340_v47 = vpop.permute.xlu1 %339 }
  0xc1   :  { %v345_v50 = vrot.slane %v340_v47, %v120_v49 }
  0xc6   :  { %v407_v9 = vpop.eup %406 }
  0xc7   :  { %374 = vmatprep.subr.mxu0 %v407_v9  ;;  %388 = vmatprep.subr.mxu1 %v407_v9  ;;  %v409_v10 = vpop.eup %408 }
  0xc8   :  { %375 = vmatpush3.msra.mxu0 %v407_v9  ;;  %392 = vmatpush3.msra.mxu1 %v407_v9  ;;  %v411_v11 = vpop.eup %410 }
  0xc9   :  { %376 = vmatprep.subr.mxu0 %v409_v10  ;;  %389 = vmatprep.subr.mxu1 %v409_v10  ;;  %v413_v12 = vpop.eup %412 }
  0xca   :  { %377 = vmatpush3.msra.mxu0 %v409_v10  ;;  %393 = vmatpush3.msra.mxu1 %v409_v10 }
  0xcb   :  { %378 = vmatprep.subr.mxu0 %v411_v11  ;;  %390 = vmatprep.subr.mxu1 %v411_v11 }
  0xcc   :  { %379 = vmatpush3.msra.mxu0 %v411_v11  ;;  %394 = vmatpush3.msra.mxu1 %v411_v11 }
  0xcd   :  { %380 = vmatprep.subr.mxu0 %v413_v12  ;;  %391 = vmatprep.subr.mxu1 %v413_v12 }
  0xce   :  { %381 = vmatpush3.msra.mxu0 %v413_v12  ;;  %395 = vmatpush3.msra.mxu1 %v413_v12 }
  0xcf   :  { %383 = vmatmul.mubr.msk.f32.vlgmr.msra.gmra.mxu0 %vm202_vm0, %v38_v13  ;;  %386 = vmatmul.mubr.msk.f32.vlgmr.msra.gmra.mxu1 %vm202_vm0, %v40_v14 }
 0x18f   :  { %v384_v19 = vpop.f32.mrf.mxu0  ;;  %v387_v20 = vpop.f32.mrf.mxu1 }
 0x190   :  { %v287_v21 = vadd.f32 %v384_v19, %v190_v16  ;;  %v297_v24 = vadd.f32 %v387_v20, %v200_v18 }
 0x191   :  { %v281_v22 = vpop.f32.mrf.mxu0  ;;  %v291_v23 = vpop.f32.mrf.mxu1 }
 0x192   :  { %414 = vtanh.f32 %v287_v21  ;;  %v282_v25 = vadd.f32 %v281_v22, %v185_v15  ;;  %v292_v26 = vadd.f32 %v291_v23, %v195_v17 }
 0x194   :  { %416 = vtanh.f32 %v282_v25 }
 0x195   :  { %418 = vtanh.f32 %v292_v26 }
 0x196   :  { %420 = vtanh.f32 %v297_v24 }
 0x19f   :  { %v415_v29 = vpop.eup %414 }
 0x1a0   :  { %v325_v33 = vmul.f32 %v415_v29, %v312_v28 }
 0x1a1   :  { %v417_v31 = vpop.eup %416 }
 0x1a2   :  { %v419_v32 = vpop.eup %418  ;;  %v324_v34 = vmul.f32 %v417_v31, %v307_v27 }
 0x1a3   :  { %v421_v35 = vpop.eup %420  ;;  %v326_v36 = vmul.f32 %v419_v32, %v317_v30 }
 0x1a4   :  { %v328_v37 = vadd.f32 %v325_v33, %v324_v34  ;;  %v327_v39 = vmul.f32 %v421_v35, %v322_v38 }
 0x1a6   :  { %v329_v40 = vadd.f32 %v328_v37, %v326_v36 }
 0x1a8   :  { %v330_v41 = vadd.f32 %v329_v40, %v327_v39 }
 0x1aa   :  { %v331_v42 = vrot.slane %v330_v41, 4 }
 0x1ac   :  { %v332_v43 = vadd.f32 %v331_v42, %v330_v41 }
 0x1ae   :  { %v333_v44 = vrot.slane %v332_v43, 2 }
 0x1b0   :  { %v334_v45 = vadd.f32 %v333_v44, %v332_v43 }
 0x1b2   :  { %v335_v48 = vrot.slane %v334_v45, 1 }
 0x1b4   :  { %v336_v51 = vadd.f32 %v335_v48, %v334_v45 }
 0x1b6   :  { %v346_v52 = vadd.f32 %v345_v50, %v336_v51 }
 0x1b8   :  { %347 = vst [vmem:[#allocation3] sm:$0x1] %v346_v52 }
 0x1b9   :  { %433 = shalt.err (!%p430_p4)
}
 0x1ba   :  { %357 = dma.vmem_to_hbm [thread:$0]  %s355_s17, 16, %s620_s7, [#allocation4]  }
 0x1bb   :  { %442 = dma.done.wait [#allocation4], 16  }
 0x1bc   :  { %443 = vsyncadd [#allocation4], 4294967280 }
 0x1bd   :  { %361 = vsyncpa [#allocation4], 1 }

</bundles_post_ra>
